<compile_context>
chip_gen: v7x
topology: tpu7x:2x2x1
jax: 0.10.0
libtpu: 0.0.40
codegen_flags: <defaults>
</compile_context>

<pallas_src>
import functools

import jax
import jax.numpy as jnp
import numpy as np
from jax import lax
from jax.experimental import pallas as pl
from jax.experimental.pallas import tpu as pltpu


def _align_corners_matrix(in_size: int, out_size: int) -> np.ndarray:
    """(out_size, in_size) matrix implementing PyTorch's 1-D linear
    interpolation with align_corners=True."""
    A = np.zeros((out_size, in_size), dtype=np.float32)
    if in_size == 1:
        A[:, 0] = 1.0
        return A
    scale = (in_size - 1) / (out_size - 1) if out_size > 1 else 0.0
    for o in range(out_size):
        src = o * scale
        i0 = min(int(np.floor(src)), in_size - 1)
        i1 = min(i0 + 1, in_size - 1)
        frac = src - i0
        A[o, i0] += 1.0 - frac
        A[o, i1] += frac
    return A


@functools.lru_cache(maxsize=None)
def _kron_upsample_matrix(H: int, W: int, sf: int) -> np.ndarray:
    """(H*W, H*sf*W*sf) matrix implementing the separable 2-D bilinear
    align_corners=True upsample as one right-matmul on the flattened
    (row-major, NCHW) spatial axis."""
    A_h = _align_corners_matrix(H, H * sf)        # (H_out, H)
    A_w = _align_corners_matrix(W, W * sf)        # (W_out, W)
    # Z[c, p*W_out + q] = sum_{h,w} A_h[p,h] * A_w[q,w] * Y[c, h*W + w]
    return np.kron(A_h, A_w).T.copy()             # (H*W, H_out*W_out)


def _fcn_upsample_kernel(x_ref, w_ref, b_ref, a_ref, o_ref):
    # x_ref: (bb*C_in, HW)        stacked input channels for bb images
    # w_ref: (bb*C_out, bb*C_in)  block-diagonal 1x1-conv weight kron(I_bb, W)
    # b_ref: (bb*C_out, 1)        bias tiled per image
    # a_ref: (HW, TN)             column tile of the bilinear kron matrix
    # o_ref: (bb*C_out, TN)       stacked, lane/sublane-dense output tile
    #
    # One conv matmul + one bias broadcast + ONE stacked upsample matmul per
    # grid step (no per-image loop, no repeated broadcast_in_dim, no repeated
    # RHS pushes of the A tile).
    y = jnp.dot(w_ref[...], x_ref[...],
                preferred_element_type=jnp.float32,
                precision=lax.Precision.HIGHEST) + b_ref[...]
    o_ref[...] = jnp.dot(y, a_ref[...],
                         preferred_element_type=jnp.float32,
                         precision=lax.Precision.HIGHEST).astype(o_ref.dtype)


def _pad_bytes(rows: int, cols: int) -> int:
    """f32 VMEM footprint of an (8,128)-padded tile."""
    return (-(-rows // 8) * 8) * (-(-cols // 128) * 128) * 4


def _vmem_budget_bytes() -> int:
    """Generation-aware VMEM budget (~3/4 of physical: ~96 MiB on v5e/v6e,
    ~48 MiB on v7x) instead of a flat 32 MiB cap."""
    cap = None
    try:
        cap = getattr(pltpu.get_tpu_info(), "vmem_capacity_bytes", None)
    except Exception:
        cap = None
    if not cap:
        cap = 64 * 1024 * 1024          # conservative fallback (v7x physical)
    return int(cap) * 3 // 4


def _pick_tiles(N, C_in, C_out, HW, HoWo, budget):
    """Choose (batch block bb, output-column tile TN, per-step VMEM bytes)."""

    def step_bytes(bb, tn):
        m = bb * C_out
        return (2 * _pad_bytes(bb * C_in, HW)       # x blocks (double-buffered)
                + 2 * _pad_bytes(HW, tn)            # A column blocks
                + 2 * _pad_bytes(m, tn)             # output blocks
                + 2 * _pad_bytes(m, bb * C_in)      # block-diag conv weight (tiny)
                + 2 * _pad_bytes(m, 1)              # bias (tiny)
                + _pad_bytes(m, HW))                # stacked conv intermediate

    # Batch blocks: divisors of N whose folded row counts are 8-row aligned on
    # both the input (bb*C_in) and output (bb*C_out) side -> unmasked stores
    # and dense DMA.  Cap at 32 images so the block-diagonal conv's padded
    # K = bb*C_in stays small relative to the HoWo-wide upsample matmul.
    bb_cands = [d for d in range(1, min(N, 32) + 1)
                if N % d == 0 and (d * C_out) % 8 == 0 and (d * C_in) % 8 == 0]
    if not bb_cands:
        # Whole batch in one block: every block dim then equals the full array
        # dim, which is always a legal block shape.
        bb_cands = [N]
    bb_cands.sort(reverse=True)

    # Column tiles: multiples of 128 dividing Ho*Wo (lane-dense, unmasked vst).
    tn_cands = sorted((t for t in range(128, HoWo + 1, 128) if HoWo % t == 0),
                      reverse=True)
    if not tn_cands:
        tn_cands = [HoWo]

    tn_min = tn_cands[-1]
    bb = next((b for b in bb_cands if step_bytes(b, tn_min) <= budget),
              bb_cands[-1])
    fitting = [t for t in tn_cands if step_bytes(bb, t) <= budget] or [tn_min]
    # Prefer >= 8 total grid steps (>= 4 per v7x TensorCore) so the BlockSpec
    # software pipeline has DMA to overlap; otherwise take the largest tile.
    deep = [t for t in fitting if (N // bb) * (HoWo // t) >= 8]
    tn = deep[0] if deep else fitting[0]
    return bb, tn, step_bytes(bb, tn)


def fcn_upsampling_module(x, weight, bias, scale_factor=2):
    """Forward pass of GANDLF FCNUpsamplingModule with nn.Conv2d defaults.

    x: (N, C_in, H, W) float32
    weight: (C_out, C_in) or (C_out, C_in, 1, 1)
    bias: (C_out,)
    """
    assert x.ndim == 4, "expected NCHW input (nn.Conv2d default path)"
    if weight.ndim == 4:
        assert weight.shape[2:] == (1, 1), (
            "only the module-default 1x1 conv (stride=1, padding=0) is supported")
        weight = weight.reshape(weight.shape[0], weight.shape[1])
    N, C_in, H, W = x.shape
    C_out = weight.shape[0]
    assert weight.shape == (C_out, C_in) and bias.shape == (C_out,)

    sf = 2 ** (scale_factor - 1)
    H_out, W_out = H * sf, W * sf
    HW, HoWo = H * W, H_out * W_out

    budget = _vmem_budget_bytes()
    bb, tn, est_bytes = _pick_tiles(N, C_in, C_out, HW, HoWo, budget)
    if est_bytes > budget:
        # TODO(synk): also tile the H*W contraction axis (or use the separable
        # two-matmul path) when one (HW, TN) column slab of A exceeds VMEM.
        raise ValueError(
            f"per-step VMEM estimate {est_bytes}B exceeds budget {budget}B; "
            "this H*W needs a contraction-tiled / separable fallback")

    nb, nc = N // bb, HoWo // tn
    grid = (nb, nc)

    A = jnp.asarray(_kron_upsample_matrix(H, W, sf))             # (HW, HoWo)
    w32 = weight.astype(jnp.float32)
    # Block-diagonal conv weight: ONE sublane-dense matmul per grid step that
    # directly produces the stacked (bb*C_out, HW) conv result, instead of bb
    # tiny K=C_in MXU dots.  bb is capped so the K=bb*C_in padding stays small
    # relative to the HoWo-wide upsample matmul.
    w_big = jnp.kron(jnp.eye(bb, dtype=jnp.float32), w32)        # (bb*C_out, bb*C_in)
    b_big = jnp.tile(bias.astype(jnp.float32), bb).reshape(bb * C_out, 1)

    x_flat = x.reshape(N * C_in, HW)            # free metadata reshape

    m = bb * C_out
    cost = pl.CostEstimate(
        flops=int(nb * nc * 2 * m * HW * (bb * C_in + tn)),
        transcendentals=0,
        bytes_accessed=int(4 * (N * C_in * HW + N * C_out * HoWo
                                + nb * HW * HoWo + m * (bb * C_in + 1))))

    out_flat = pl.pallas_call(
        _fcn_upsample_kernel,
        out_shape=jax.ShapeDtypeStruct((N * C_out, HoWo), x.dtype),
        grid_spec=pltpu.PrefetchScalarGridSpec(
            num_scalar_prefetch=0,
            grid=grid,
            in_specs=[
                # x block index is constant along the inner column axis, so the
                # pipeline fetches each batch block from HBM once.
                pl.BlockSpec((bb * C_in, HW), lambda n, j: (n, 0)),
                # Grid-invariant conv weight / bias (tiny; fetched once).
                pl.BlockSpec((bb * C_out, bb * C_in), lambda n, j: (0, 0)),
                pl.BlockSpec((bb * C_out, 1), lambda n, j: (0, 0)),
                # Column tile of the bilinear matrix: double-buffered by the
                # pipeline so the next slab streams while this one is in the MXU.
                pl.BlockSpec((HW, tn), lambda n, j: (0, j)),
            ],
            out_specs=pl.BlockSpec((bb * C_out, tn), lambda n, j: (n, j)),
        ),
        compiler_params=pltpu.CompilerParams(
            dimension_semantics=("parallel", "parallel"),
            vmem_limit_bytes=budget),
        cost_estimate=cost,
    )(x_flat, w_big, b_big, A)

    # Free metadata reshape back to NCHW.
    return out_flat.reshape(N, C_out, H_out, W_out)


def _reference(x, weight, bias, scale_factor=2):
    """Pure-JAX reference (separable formulation) for the correctness check."""
    N, C_in, H, W = x.shape
    sf = 2 ** (scale_factor - 1)
    A_h = jnp.asarray(_align_corners_matrix(H, H * sf))
    A_w = jnp.asarray(_align_corners_matrix(W, W * sf))
    y = jnp.einsum("oc,nchw->nohw", weight, x,
                   precision=lax.Precision.HIGHEST) + bias[None, :, None, None]
    z = jnp.einsum("ph,nchw,qw->ncpq", A_h, y, A_w,
                   precision=lax.Precision.HIGHEST)
    return z


if __name__ == "__main__":
    key = jax.random.PRNGKey(0)
    k_x, k_w, k_b = jax.random.split(key, 3)

    N, C_in, C_out, H, W = 2, 4, 3, 16, 16
    x = jax.random.normal(k_x, (N, C_in, H, W), dtype=jnp.float32)
    # Deterministic synthetic parameters for the 1x1 Conv2d.
    weight = jax.random.normal(k_w, (C_out, C_in), dtype=jnp.float32) * 0.1
    bias = jax.random.normal(k_b, (C_out,), dtype=jnp.float32) * 0.1

    out = jax.block_until_ready(
        fcn_upsampling_module(x, weight, bias, scale_factor=2))
    ref = jax.block_until_ready(_reference(x, weight, bias, scale_factor=2))

    assert out.shape == (N, C_out, 2 * H, 2 * W), out.shape
    np.testing.assert_allclose(np.asarray(out), np.asarray(ref),
                               rtol=1e-5, atol=1e-5)
    print("KERNEL_OK")
</pallas_src>

<mosaic_0001>
module attributes {stable_mosaic.version = 11 : i64} {
  func.func @_fcn_upsample_kernel(%arg0: i32, %arg1: i32, %arg2: memref<8x256xf32, #tpu.memory_space<vmem>>, %arg3: memref<6x8xf32, #tpu.memory_space<vmem>>, %arg4: memref<6x1xf32, #tpu.memory_space<vmem>>, %arg5: memref<256x128xf32, #tpu.memory_space<vmem>>, %arg6: memref<6x128xf32, #tpu.memory_space<vmem>>) attributes {dimension_semantics = [#tpu.dimension_semantics<parallel>, #tpu.dimension_semantics<parallel>], iteration_bounds = array<i64: 1, 8>, scalar_prefetch = 0 : i64, scratch_operands = 0 : i64, tpu.core_type = #tpu.core_type<tc>, window_params = [{transform_indices = @transform_0, window_bounds = array<i64: 8, 256>}, {pipeline_mode = #tpu.pipeline_mode<synchronous>, transform_indices = @transform_1, window_bounds = array<i64: 6, 8>}, {pipeline_mode = #tpu.pipeline_mode<synchronous>, transform_indices = @transform_2, window_bounds = array<i64: 6, 1>}, {transform_indices = @transform_3, window_bounds = array<i64: 256, 128>}, {transform_indices = @transform_4, window_bounds = array<i64: 6, 128>}]} {
    %c0 = arith.constant 0 : index
    %c0_0 = arith.constant 0 : index
    %0 = vector.load %arg3[%c0, %c0_0] : memref<6x8xf32, #tpu.memory_space<vmem>>, vector<6x8xf32>
    %c0_1 = arith.constant 0 : index
    %c0_2 = arith.constant 0 : index
    %1 = vector.load %arg2[%c0_1, %c0_2] : memref<8x256xf32, #tpu.memory_space<vmem>>, vector<8x256xf32>
    %cst = arith.constant dense<0.000000e+00> : vector<6x256xf32>
    %2 = tpu.matmul %0, %1, %cst {dimension_numbers = #tpu.dot_dimension_numbers<[1], [0], [0], [1], [0, 0, 1, 1], [], []>, precision = #tpu.contract_precision<fp32>} : vector<6x8xf32>, vector<8x256xf32>, vector<6x256xf32> -> vector<6x256xf32>
    %c0_3 = arith.constant 0 : index
    %c0_4 = arith.constant 0 : index
    %3 = vector.load %arg4[%c0_3, %c0_4] : memref<6x1xf32, #tpu.memory_space<vmem>>, vector<6x1xf32>
    %4 = vector.broadcast %3 : vector<6x1xf32> to vector<6x256xf32>
    %5 = arith.addf %2, %4 : vector<6x256xf32>
    %c0_5 = arith.constant 0 : index
    %c0_6 = arith.constant 0 : index
    %6 = vector.load %arg5[%c0_5, %c0_6] : memref<256x128xf32, #tpu.memory_space<vmem>>, vector<256x128xf32>
    %cst_7 = arith.constant dense<0.000000e+00> : vector<6x128xf32>
    %7 = tpu.matmul %5, %6, %cst_7 {dimension_numbers = #tpu.dot_dimension_numbers<[1], [0], [0], [1], [0, 0, 1, 1], [], []>, precision = #tpu.contract_precision<fp32>} : vector<6x256xf32>, vector<256x128xf32>, vector<6x128xf32> -> vector<6x128xf32>
    %c0_8 = arith.constant 0 : index
    %c0_9 = arith.constant 0 : index
    %8 = vector.load %arg6[%c0_8, %c0_9] : memref<6x128xf32, #tpu.memory_space<vmem>>, vector<6x128xf32>
    tpu.vector_store %arg6[%c0_8, %c0_9], %7 {strides = array<i32>} : memref<6x128xf32, #tpu.memory_space<vmem>>, vector<6x128xf32>,
    return
  }
  func.func @transform_0(%arg0: i32, %arg1: i32) -> (i32, i32) {
    %c0_i32 = arith.constant 0 : i32
    %c0_i32_0 = arith.constant 0 : i32
    return %arg0, %c0_i32 : i32, i32
  }
  func.func @transform_1(%arg0: i32, %arg1: i32) -> (i32, i32) {
    %c0_i32 = arith.constant 0 : i32
    %c0_i32_0 = arith.constant 0 : i32
    %c0_i32_1 = arith.constant 0 : i32
    return %c0_i32, %c0_i32_0 : i32, i32
  }
  func.func @transform_2(%arg0: i32, %arg1: i32) -> (i32, i32) {
    %c0_i32 = arith.constant 0 : i32
    %c0_i32_0 = arith.constant 0 : i32
    %c0_i32_1 = arith.constant 0 : i32
    return %c0_i32, %c0_i32_0 : i32, i32
  }
  func.func @transform_3(%arg0: i32, %arg1: i32) -> (i32, i32) {
    %c0_i32 = arith.constant 0 : i32
    %c0_i32_0 = arith.constant 0 : i32
    return %c0_i32, %arg1 : i32, i32
  }
  func.func @transform_4(%arg0: i32, %arg1: i32) -> (i32, i32) {
    %c0_i32 = arith.constant 0 : i32
    return %arg0, %arg1 : i32, i32
  }
}

</mosaic_0001>

<bundles_post_ra>
// kernel: tpu_custom_call.1
= control target key start
LH: loop header
LB: loop body
LE: loop exit
PB: predicated region body
PF: predicated region fallthrough
CT: control target
= control target key end

     0   :  { %9 = vsyncpa [#allocation3], 0  ;;  %s3323_s0 = inlined_call_operand.hbm [shape: f32[8,256], index: 0, kind: input, shape index: {}]   ;;  %s3324_s1 = inlined_call_operand.vmem [shape: f32[6,8], index: 1, kind: input, shape index: {}]   ;;  %s3325_s2 = inlined_call_operand.vmem [shape: f32[6,1], index: 2, kind: input, shape index: {}]   ;;  %s3326_s3 = inlined_call_operand.hbm [shape: f32[256,1024], index: 3, kind: input, shape index: {}]   ;;  %s3327_s4 = inlined_call_operand.hbm [shape: f32[6,1024], index: 4, kind: output, shape index: {}]  }
   0x1   :  { %10 = vsyncpa [#allocation6], 0 }
   0x2   :  { %12 = vsyncpa [#allocation6 + $0x1], 0 }
   0x3   :  { %13 = vsyncpa [#allocation4], 0 }
   0x4   :  { %15 = vsyncpa [#allocation4 + $0x1], 0  ;;  %s2420_s15 = smov 0   ;;  %s2422_s16 = smov 0  }
   0x5   :  { %s2424_s17 = smov 0   ;;  %s2426_s18 = smov 0  }
   0x6   :  { %s2428_s19 = smov 0   ;;  %s2430_s20 = smov 0  }
   0x7 LB: > { %s1733_s21 = sadd.s32 4294967295, %s2385_s20   ;;  %s1734_s22 = sadd.s32 4294967294, %s2385_s20   ;;  %s2385_s20 = sphi %s2430_s20, %s21_s20   ;;  %s2381_s19 = sphi %s2428_s19, %s3480_s19   ;;  %s2377_s18 = sphi %s2426_s18, %s3479_s18   ;;  %s2373_s17 = sphi %s2424_s17, %s3478_s17   ;;  %s2369_s16 = sphi %s2422_s16, %s3477_s16   ;;  %s2365_s15 = sphi %s2420_s15, %s3476_s15  }
   0x8   : > { %s108_s23 = sadd.s32 1, %s2373_s17  ;;  %p115_p0 = scmp.ne.s32.totalorder %s2373_s17, %s2369_s16 }
   0x9   : > { %p116_p1 = scmp.eq.s32.totalorder %s2385_s20, 0  ;;  %p121_p2 = scmp.ne.s32.totalorder %s2369_s16, %s2365_s15 }
   0xa   : > { %p2458_p3 = scmp.eq.s32.totalorder %s1733_s21, 0  ;;  %p147_p4 = scmp.eq.s32.totalorder %s1733_s21, 7 }
   0xb   : > { %p2462_p5 = por %p116_p1, %p115_p0  ;;  %p153_p6 = scmp.eq.s32.totalorder %s1734_s22, 7 }
   0xc   : > { %s3395_s24 = scalar_select %p2458_p3, 1, 0 }
   0xd   : > { %p2468_p7 = por %p2458_p3, %p121_p2  ;;  %p2472_p8 = por %p147_p4, %p115_p0 }
   0xe   : > { %p2476_p9 = por %p153_p6, %p121_p2  ;;  %p1735_p10 = scmp.ge.s32.totalorder %s2385_s20, 1 }
   0xf   : > { %s3397_s26 = scalar_select %p2468_p7, 1, 0 }
  0x10   : > { %s3398_s27 = scalar_select %p2472_p8, 1, 0 }
  0x11   : > { %s3399_s28 = scalar_select %p2476_p9, 1, 0 }
  0x12   : > { %p160_p11 = scmp.lt.s32.totalorder %s2385_s20, 9  ;;  %s2387_s30 = smov [#allocation2]  }
  0x13   : > { %s176_s5 = sshll.u32 %s2387_s30, 4  ;;  %p2183_p13 = scmp.lt.s32.totalorder %s2385_s20, 8  ;;  %s177_s5 = int_to_ptr.vmem [resolvable:$true] %s176_s5 }
  0x14   : > { %p2482_p12 = pnand %p1735_p10, %p160_p11  ;;  %s30_s8 = sadd.s32 1, %s2381_s19 }
  0x15   : > { %p2491_p1 = pnand %p2183_p13, %p2462_p5  ;;  %p2502_p4 = scmp.ge.s32.totalorder %s30_s8, 8 }
  0x16   : > { %s3400_s29 = scalar_select %p2482_p12, 1, 0 }
  0x17   : > { %p2170_p0 = pneg %p2482_p12  ;;  %s193_s10 = sand.u32 1, %s2373_s17  }
  0x18   : > { %s3401_s6 = scalar_select %p2491_p1, 1, 0 }
  0x19   : > { %p2497_p2 = pnand %p2170_p0, %p2458_p3  ;;  %s2241_s13 = scalar_lea.hbm %s3323_s0, 256 }
  0x1a   : > { %s3403_s9 = scalar_select %p2502_p4, 1, 0 }
  0x1b   : > { %p2242_p5 = scmp.ne.s32.totalorder %s3323_s0, %s2241_s13  ;;  %p2243_p6 = pneg %p2497_p2 }
  0x1c   : > { %p2248_p13 = scmp.lt.u32.totalorder %s2241_s13, %s3323_s0 }
  0x1d   : > { %p2244_p10 = pnand %p2243_p6, %p2242_p5 }
  0x1f   : > { %p2245_p11 = pneg %p2244_p10 }
  0x21   : > { %p2250_p0 = pnand %p2248_p13, %p2245_p11 }
  0x23   : > { %2253 = shalt.err (!%p2250_p0)
}
  0x24   : > { %s2254_s30 = scalar_lea.vmem %s177_s5, 256  ;;  %p2262_p3 = scmp.lt.s32.totalorder %s177_s5, %s177_s5 }
  0x25   : > { %p2255_p9 = scmp.ne.s32.totalorder %s177_s5, %s2254_s30  ;;  %p2263_p12 = scmp.lt.s32.totalorder %s2254_s30, %s2254_s30 }
  0x27   : > { %p2257_p8 = pnand %p2255_p9, %p2243_p6  ;;  %p2264_p1 = por %p2263_p12, %p2262_p3 }
  0x29   : > { %p2258_p7 = pneg %p2257_p8 }
  0x2b   : > { %p2265_p4 = pnand %p2264_p1, %p2258_p7 }
  0x2d   : > { %2268 = shalt.err (!%p2265_p4)
}
  0x2e   : > { %2173 = dma.hbm_to_vmem [thread:$0]  (!%p2497_p2), %s3323_s0, 256, %s177_s5, [#allocation3]  }
  0x2f   : > { %p3404_p9 = scmp.ne.s32.totalorder %s3403_s9, 0  ;;  %s1738_s13 = sshll.u32 %s193_s10, 8 }
  0x30   : > { %s1739_s21 = sshll.u32 %s2381_s19, 7  ;;  %s197_s30 = scalar_lea.vmem [#allocation5], %s1738_s13 }
  0x31   : > { %s3482_s8 = smov (%p3404_p9, %s30_s8), 0  ;;  %s2533_s25 = scalar_lea.hbm %s3326_s3, %s1739_s21 }
  0x32   : > { %s105_s14 = ssub.s32 %s2381_s19, %s3482_s8  ;;  %s203_s11 = sshll.u32 %s197_s30, 4  ;;  %s2540_s11 = int_to_ptr.vmem [resolvable:$true] %s203_s11 }
  0x33   : > { %p106_p3 = scmp.eq.s32.totalorder %s105_s14, 0  ;;  %s2542_s9 = scalar_lea.sflag [#allocation6], %s193_s10 }
  0x34   : > { %s2269_s12 = scalar_lea.hbm %s2533_s25, 4096  ;;  %p3405_p8 = scmp.ne.s32.totalorder %s3401_s6, 0 }
  0x35   : > { %s2538_s5 = scalar_select %p106_p3, %s2373_s17, %s108_s23  }
  0x36   : > { %p2270_p7 = scmp.ne.s32.totalorder %s2533_s25, %s2269_s12  ;;  %p2271_p12 = pneg %p3405_p8 }
  0x37   : > { %s2274_s13 = scalar_lea.hbm %s3326_s3, 32768  ;;  %p2275_p4 = scmp.lt.u32.totalorder %s2533_s25, %s3326_s3 }
  0x38   : > { %p2272_p1 = pnand %p2271_p12, %p2270_p7  ;;  %p2276_p5 = scmp.lt.u32.totalorder %s2274_s13, %s2269_s12 }
  0x39   : > { %p2278_p10 = scmp.lt.u32.totalorder %s2269_s12, %s2533_s25 }
  0x3a   : > { %p2273_p2 = pneg %p2272_p1  ;;  %p2277_p6 = por %p2276_p5, %p2275_p4 }
  0x3c   : > { %p2279_p11 = por %p2278_p10, %p2277_p6 }
  0x3e   : > { %p2280_p13 = pnand %p2279_p11, %p2273_p2 }
  0x40   : > { %2283 = shalt.err (!%p2280_p13)
}
  0x41   : > { %s2284_s23 = scalar_lea.vmem %s2540_s11, 4096  ;;  %s2388_s10 = smov [#allocation5]  }
  0x42   : > { %p2285_p0 = scmp.ne.s32.totalorder %s2540_s11, %s2284_s23  ;;  %s2289_s30 = sshll.u32 %s2388_s10, 4  ;;  %s2290_s30 = int_to_ptr.vmem [resolvable:$false] %s2289_s30 }
  0x43   : > { %s2291_s14 = scalar_lea.vmem %s2290_s30, 8192  ;;  %p2292_p7 = scmp.lt.s32.totalorder %s2540_s11, %s2290_s30 }
  0x44   : > { %p2287_p9 = pnand %p2285_p0, %p2271_p12  ;;  %p2293_p1 = scmp.lt.s32.totalorder %s2291_s14, %s2284_s23 }
  0x46   : > { %p2288_p3 = pneg %p2287_p9  ;;  %p2294_p4 = por %p2293_p1, %p2292_p7 }
  0x48   : > { %p2295_p5 = pnand %p2294_p4, %p2288_p3 }
  0x4a   : > { %2298 = shalt.err (!%p2295_p5)
}
  0x4b   : > { %s2389_s12 = smov 1024   ;;  %s2390_s21 = smov 128  }
  0x4c   : > { %s2391_s13 = smov 8   ;;  %p3406_p12 = scmp.ne.s32.totalorder %s3400_s29, 0 }
  0x4d   : > { %2177 = dma.hbm_to_vmem [thread:$0]  (!%p3405_p8), %s2533_s25, 4096, %s2540_s11, %s2542_s9, %s2389_s12, %s2390_s21, %s2391_s13  }
  0x4e   : > { %215 = sbr.rel (%p3406_p12) target bundleno = 646 (0x286), region = 36 }
  0x55   : > { %p3407_p2 = scmp.ne.s32.totalorder %s3395_s24, 0 }
  0x57   : > { %2352 = dma.done.wait (%p3407_p2), [#allocation3], 256  }
  0x58   : > { %2354 = vsyncadd (%p3407_p2), [#allocation3], 4294967040  ;;  %s2577_s7 = sand.u32 1, %s2369_s16   ;;  %p3408_p8 = scmp.ne.s32.totalorder %s3397_s26, 0 }
  0x59   : > { %s1742_s22 = sshll.u32 %s2577_s7, 8  ;;  %s222_s23 = scalar_lea.sflag [#allocation6], %s2577_s7 }
  0x5a   : > { %s2581_s10 = scalar_lea.vmem [#allocation5], %s1742_s22 }
  0x5b   : > { %2356 = dma.done.wait (%p3408_p8), %s222_s23, 4096  }
  0x5c   : > { %2358 = vsyncadd (%p3408_p8), %s222_s23, 4294963200  ;;  %v2392_v0 = vmov 0.0   ;;  %v2393_v1 = vmov 0   ;;  %vm259_vm0 = vcmask 64512   ;;  %v252_v2 = vld [vmem:[#allocation2 + $0x8] sm:$0xff]  ;;  %v251_v3 = vld [vmem:[#allocation2] sm:$0xff] }
  0x5d   : > { %566 = vmatprep.mubr.f32.mxu0 %v2392_v0  ;;  %329 = vmatprep.mubr.f32.mxu1 %v2392_v0  ;;  %v250_v4 = vld [vmem:[%s3324_s1] sm:$0x3f]  ;;  %v263_v5 = vand.u32 4294901760, %v252_v2  ;;  %v2592_v6 = vand.u32 4294901760, %v251_v3  ;;  %v2598_v9 = vld [vmem:[%s2581_s10 + $0x80] sm:$0xff]  ;;  %v2603_v11 = vld [vmem:[%s2581_s10 + $0x88] sm:$0xff] }
  0x5e   : > { %2240 = vset.pattern.permute.xlu0 %v2393_v1  ;;  %v261_v7 = vsel %vm259_vm0, %v250_v4, 0  ;;  %v253_v8 = vld [vmem:[%s3325_s2] sm:$0x3f]  ;;  %v809_v12 = vand.u32 4294901760, %v2598_v9  ;;  %v2607_v13 = vld [vmem:[%s2581_s10] sm:$0xff]  ;;  %v2610_v14 = vld [vmem:[%s2581_s10 + $0x8] sm:$0xff] }
  0x5f   : > { %v2600_v10 = vand.u32 4294901760, %v261_v7  ;;  %256 = vperm.xlu0 %2240, %v253_v8   ;;  %501 = vmatprep.subr.mxu0 %v263_v5  ;;  %v2613_v15 = vsub.f32 %v251_v3, %v2592_v6  ;;  %v342_v16 = vsub.f32 %v252_v2, %v263_v5  ;;  %v812_v17 = vand.u32 4294901760, %v2603_v11  ;;  %v2618_v19 = vld [vmem:[%s2581_s10 + $0x90] sm:$0xff]  ;;  %v2621_v20 = vld [vmem:[%s2581_s10 + $0x98] sm:$0xff]  ;;  %v2683_v51 = vld [vmem:[%s2581_s10 + $0xa0] sm:$0xff]  ;;  %s1743_s25 = sshll.u32 %s2577_s7, 3 }
  0x60   : > { %264 = vmatprep.subr.mxu1 %v263_v5  ;;  %v761_v18 = vand.u32 4294901760, %v2607_v13  ;;  %503 = vmatpush1.msra.mxu0 %v2592_v6  ;;  %v2631_v22 = vsub.f32 %v2598_v9, %v809_v12  ;;  %v764_v23 = vand.u32 4294901760, %v2610_v14  ;;  %v815_v24 = vand.u32 4294901760, %v2618_v19  ;;  %v2666_v41 = vld [vmem:[%s2581_s10 + $0x10] sm:$0xff]  ;;  %v2676_v46 = vld [vmem:[%s2581_s10 + $0x18] sm:$0xff]  ;;  %v2692_v56 = vld [vmem:[%s2581_s10 + $0xa8] sm:$0xff] }
  0x61   : > { %v2625_v21 = vsub.f32 %v261_v7, %v2600_v10  ;;  %266 = vmatpush1.msra.mxu1 %v2592_v6  ;;  %v343_v25 = vand.u32 4294901760, %v342_v16  ;;  %v349_v26 = vand.u32 4294901760, %v2613_v15  ;;  %v2637_v27 = vsub.f32 %v2603_v11, %v812_v17  ;;  %v2707_v63 = vld [vmem:[%s2581_s10 + $0x20] sm:$0xff]  ;;  %v2710_v1 = vld [vmem:[%s2581_s10 + $0x28] sm:$0xff]  ;;  %s1745_s11 = sshll.u32 %s2377_s18, 7  ;;  %s249_s9 = scalar_lea.vmem [#allocation7], %s1743_s25 }
  0x62   : > { %v2642_v28 = vsub.f32 %v2607_v13, %v761_v18  ;;  %v3353_v30 = vand.u32 4294901760, %v2631_v22  ;;  %v2649_v31 = vsub.f32 %v2610_v14, %v764_v23  ;;  %v818_v32 = vand.u32 4294901760, %v2621_v20  ;;  %v2786_v13 = vld [vmem:[%s2581_s10 + $0x38] sm:$0xff]  ;;  %s1639_s30 = sshll.u32 %s249_s9, 4  ;;  %s3275_s21 = scalar_lea.hbm %s3327_s4, %s1745_s11  ;;  %s3277_s30 = int_to_ptr.vmem [resolvable:$true] %s1639_s30 }
  0x63   : > { %v332_v29 = vand.u32 4294901760, %v2625_v21  ;;  %v344_v33 = vsub.f32 %v342_v16, %v343_v25  ;;  %v350_v34 = vsub.f32 %v2613_v15, %v349_v26  ;;  %579 = vmatprep.subr.mxu0 %v343_v25  ;;  %v3352_v35 = vand.u32 4294901760, %v2637_v27  ;;  %s1624_s13 = scalar_lea.sflag [#allocation4], %s2577_s7  ;;  %s2299_s22 = scalar_lea.vmem %s3277_s30, 128 }
  0x64   : > { %v3351_v36 = vand.u32 4294901760, %v2642_v28  ;;  %v988_v38 = vsub.f32 %v2631_v22, %v3353_v30  ;;  %v3350_v39 = vand.u32 4294901760, %v2649_v31  ;;  %v2663_v40 = vsub.f32 %v2618_v19, %v815_v24  ;;  %p2300_p6 = scmp.ne.s32.totalorder %s3277_s30, %s2299_s22  ;;  %p3474_p10 = scmp.ne.s32.totalorder %s3398_s27, 0 }
  0x65   : > { %570 = vmatmul.mubr.f32.vlgmr.msra.gmra.mrb[0].mxu0 %v332_v29  ;;  %v333_v37 = vsub.f32 %v2625_v21, %v332_v29  ;;  %v345_v42 = vand.u32 4294901760, %v344_v33  ;;  %v351_v43 = vand.u32 4294901760, %v350_v34  ;;  %v995_v44 = vsub.f32 %v2637_v27, %v3352_v35  ;;  %s2394_s18 = smov [#allocation7]  }
  0x66   : > { %583 = vmatpush1.msra.mxu0 %v349_v26  ;;  %646 = vmatprep.mubr.f32.mxu0 %v2392_v0  ;;  %v876_v45 = vsub.f32 %v2642_v28, %v3351_v36  ;;  %v989_v48 = vand.u32 4294901760, %v988_v38  ;;  %v883_v49 = vsub.f32 %v2649_v31, %v3350_v39  ;;  %v3345_v50 = vand.u32 4294901760, %v2663_v40  ;;  %v2741_v26 = vld [vmem:[%s2581_s10 + $0xb0] sm:$0xff]  ;;  %v2966_v39 = vld [vmem:[%s2581_s10 + $0x60] sm:$0xff]  ;;  %v2969_v36 = vld [vmem:[%s2581_s10 + $0x68] sm:$0xff]  ;;  %p2301_p11 = pnand %p2300_p6, %p3474_p10  ;;  %s2303_s23 = sshll.u32 %s2394_s18, 4  ;;  %s2304_s23 = int_to_ptr.vmem [resolvable:$false] %s2303_s23 }
  0x67   : > { %v334_v47 = vand.u32 4294901760, %v333_v37  ;;  %655 = vmatprep.subr.mxu0 %v263_v5  ;;  %346 = vmatprep.subr.mxu1 %v345_v42  ;;  %v996_v52 = vand.u32 4294901760, %v995_v44  ;;  %v2688_v54 = vsub.f32 %v2621_v20, %v818_v32  ;;  %v767_v55 = vand.u32 4294901760, %v2666_v41  ;;  %v2764_v44 = vld [vmem:[%s2581_s10 + $0xb8] sm:$0xff]  ;;  %p2306_p0 = scmp.lt.s32.totalorder %s3277_s30, %s2304_s23 }
  0x68   : > { %v877_v53 = vand.u32 4294901760, %v876_v45  ;;  %v884_v57 = vand.u32 4294901760, %v883_v49  ;;  %v770_v58 = vand.u32 4294901760, %v2676_v46  ;;  %v1002_v59 = vsub.f32 %v2663_v40, %v3345_v50  ;;  %p2302_p13 = pneg %p2301_p11 }
  0x69   : > { %335 = vmatmul.mubr.f32.vlgmr.msra.gmra.mrb[0].mxu1 %v334_v47  ;;  %v3344_v60 = vand.u32 4294901760, %v2688_v54  ;;  %v2703_v61 = vsub.f32 %v2666_v41, %v767_v55  ;;  %v821_v62 = vand.u32 4294901760, %v2683_v51  ;;  %v1990_v2 = vpack.c.bf16 %v996_v52, %v989_v48 }
  0x6a   : > { %352 = vmatpush1.msra.mxu1 %v351_v43  ;;  %415 = vmatprep.mubr.f32.mxu1 %v2392_v0  ;;  %v2715_v3 = vsub.f32 %v2676_v46, %v770_v58  ;;  %v2719_v4 = vpack.c.bf16 %v812_v17, %v809_v12  ;;  %v824_v5 = vand.u32 4294901760, %v2692_v56  ;;  %v1992_v7 = vpack.c.bf16 %v884_v57, %v877_v53  ;;  %v2845_v46 = vld [vmem:[%s2581_s10 + $0x40] sm:$0xff] }
  0x6b   : > { %425 = vmatprep.subr.mxu1 %v342_v16  ;;  %v1009_v8 = vsub.f32 %v2688_v54, %v3344_v60  ;;  %v3343_v11 = vand.u32 4294901760, %v2703_v61  ;;  %v2729_v16 = vsub.f32 %v2683_v51, %v821_v62  ;;  %v773_v17 = vand.u32 4294901760, %v2707_v63 }
  0x6c   : > { %v3340_v9 = vand.u32 4294901760, %v2715_v3  ;;  %v2736_v12 = vsub.f32 %v2692_v56, %v824_v5  ;;  %v776_v25 = vand.u32 4294901760, %v2710_v1  ;;  %v1003_v29 = vand.u32 4294901760, %v1002_v59 }
  0x6d   : > { %648 = vmatmul.mubr.f32.vlgmr.msra.gmra.mrb[0].mxu0 %v2600_v10  ;;  %v1010_v33 = vand.u32 4294901760, %v1009_v8  ;;  %v890_v34 = vsub.f32 %v2703_v61, %v3343_v11  ;;  %v3337_v37 = vand.u32 4294901760, %v2729_v16  ;;  %v2773_v48 = vpack.c.bf16 %v764_v23, %v761_v18 }
  0x6e   : > { %657 = vmatpush1.msra.mxu0 %v2592_v6  ;;  %720 = vmatprep.mubr.f32.mxu0 %v2392_v0  ;;  %v897_v38 = vsub.f32 %v2715_v3, %v3340_v9  ;;  %v3336_v42 = vand.u32 4294901760, %v2736_v12  ;;  %v2756_v6 = vsub.f32 %v2707_v63, %v773_v17  ;;  %v2761_v43 = vsub.f32 %v2710_v1, %v776_v25 }
  0x6f   : > { %1991 = vmatprep.subr.bf16.mxu0 %v1990_v2  ;;  %v891_v45 = vand.u32 4294901760, %v890_v34  ;;  %v1016_v47 = vsub.f32 %v2729_v16, %v3337_v37  ;;  %v3372_v49 = vand.u32 4294901760, %v2741_v26  ;;  %v2783_v2 = vld [vmem:[%s2581_s10 + $0x30] sm:$0xff]  ;;  %v1994_v14 = vpack.c.bf16 %v1010_v33, %v1003_v29  ;;  %v2818_v33 = vld [vmem:[%s2581_s10 + $0xc0] sm:$0xff] }
  0x70   : > { %v898_v52 = vand.u32 4294901760, %v897_v38  ;;  %v1023_v53 = vsub.f32 %v2736_v12, %v3336_v42  ;;  %v3335_v57 = vand.u32 4294901760, %v2756_v6  ;;  %v3334_v59 = vand.u32 4294901760, %v2761_v43  ;;  %v2821_v38 = vld [vmem:[%s2581_s10 + $0xc8] sm:$0xff] }
  0x71   : > { %417 = vmatmul.mubr.f32.vlgmr.msra.gmra.mrb[0].mxu1 %v2600_v10  ;;  %v2794_v18 = vpack.c.bf16 %v818_v32, %v815_v24  ;;  %v3370_v23 = vand.u32 4294901760, %v2764_v44  ;;  %v2800_v8 = vsub.f32 %v2741_v26, %v3372_v49  ;;  %v3368_v32 = vand.u32 4294901760, %v2783_v2  ;;  %v758_v49 = vld [vmem:[%s2581_s10 + $0xf0] sm:$0xff] }
  0x72   : > { %428 = vmatpush1.msra.mxu1 %v2613_v15  ;;  %491 = vmatprep.mubr.f32.mxu1 %v2392_v0  ;;  %v1017_v15 = vand.u32 4294901760, %v1016_v47  ;;  %v1024_v34 = vand.u32 4294901760, %v1023_v53  ;;  %v904_v0 = vsub.f32 %v2756_v6, %v3335_v57  ;;  %v911_v19 = vsub.f32 %v2761_v43, %v3334_v59 }
  0x73   : > { %3409 = vst [vmem:[#allocation11_spill] sm:$0xff] %v2800_v8  ;;  %1959 = vmatprep.subr.bf16.mxu1 %v2719_v4  ;;  %v3338_v20 = vand.u32 4294901760, %v2800_v8  ;;  %v2813_v24 = vsub.f32 %v2764_v44, %v3370_v23  ;;  %v3367_v29 = vand.u32 4294901760, %v2786_v13  ;;  %v1996_v47 = vpack.c.bf16 %v898_v52, %v891_v45  ;;  %v743_v23 = vld [vmem:[%s2581_s10 + $0x78] sm:$0xff] }
  0x74   : > { %v905_v53 = vand.u32 4294901760, %v904_v0  ;;  %v912_v59 = vand.u32 4294901760, %v911_v19  ;;  %v2828_v57 = vpack.c.bf16 %v770_v58, %v767_v55  ;;  %v2848_v55 = vld [vmem:[%s2581_s10 + $0x48] sm:$0xff]  ;;  %v1998_v58 = vpack.c.bf16 %v1024_v34, %v1017_v15 }
  0x75   : > { %3410 = vst [vmem:[#allocation12_spill] sm:$0xff] %v2813_v24  ;;  %722 = vmatmul.mubr.f32.vlgmr.msra.gmra.mrb[0].mxu0 %v2600_v10  ;;  %v1030_v42 = vsub.f32 %v2800_v8, %v3338_v20  ;;  %v3339_v37 = vand.u32 4294901760, %v2813_v24  ;;  %v2837_v10 = vsub.f32 %v2783_v2, %v3368_v32  ;;  %v2842_v41 = vsub.f32 %v2786_v13, %v3367_v29 }
  0x76   : > { %1993 = vmatpush3.bf16.msra.mxu0 %v1992_v7  ;;  %v2854_v7 = vpack.c.bf16 %v824_v5, %v821_v62  ;;  %v3365_v45 = vand.u32 4294901760, %v2818_v33  ;;  %v3361_v52 = vand.u32 4294901760, %v2821_v38  ;;  %v3359_v62 = vand.u32 4294901760, %v2845_v46 }
  0x77   : > { %3411 = vst [vmem:[#allocation13_spill] sm:$0xff] %v2837_v10  ;;  %3412 = vst [vmem:[#allocation14_spill] sm:$0xff] %v2842_v41  ;;  %1995 = vmatprep.subr.bf16.mxu0 %v1994_v14  ;;  %v1031_v0 = vand.u32 4294901760, %v1030_v42  ;;  %v1037_v19 = vsub.f32 %v2813_v24, %v3339_v37  ;;  %v3342_v20 = vand.u32 4294901760, %v2837_v10  ;;  %v3341_v14 = vand.u32 4294901760, %v2842_v41 }
  0x78   : > { %v2867_v51 = vsub.f32 %v2818_v33, %v3365_v45  ;;  %v2872_v56 = vsub.f32 %v2821_v38, %v3361_v52  ;;  %v3358_v5 = vand.u32 4294901760, %v2848_v55  ;;  %v2000_v42 = vpack.c.bf16 %v912_v59, %v905_v53 }
  0x79   : > { %494 = vmatmul.mubr.f32.vlgmr.msra.gmra.mrb[0].mxu1 %v2625_v21  ;;  %v1038_v15 = vand.u32 4294901760, %v1037_v19  ;;  %v918_v21 = vsub.f32 %v2837_v10, %v3342_v20  ;;  %v925_v34 = vsub.f32 %v2842_v41, %v3341_v14  ;;  %v2889_v59 = vsub.f32 %v2845_v46, %v3359_v62 }
  0x7a   : > { %3413 = vst [vmem:[#allocation15_spill] sm:$0xff] %v2867_v51  ;;  %3414 = vst [vmem:[#allocation16_spill] sm:$0xff] %v2872_v56  ;;  %1997 = vmatpush3.bf16.msra.mxu0 %v1996_v47  ;;  %1961 = vmatpush3.bf16.msra.mxu1 %v2773_v48  ;;  %v3349_v37 = vand.u32 4294901760, %v2867_v51  ;;  %v3348_v9 = vand.u32 4294901760, %v2872_v56  ;;  %v2894_v47 = vsub.f32 %v2848_v55, %v3358_v5  ;;  %v851_v41 = vand.u32 4294901760, %v758_v49 }
  0x7b   : > { %1999 = vmatprep.subr.bf16.mxu0 %v1998_v58  ;;  %1963 = vmatprep.subr.bf16.mxu1 %v2794_v18  ;;  %3415 = vst [vmem:[#allocation17_spill] sm:$0xff] %v2889_v59  ;;  %v2002_v53 = vpack.c.bf16 %v1038_v15, %v1031_v0  ;;  %v919_v19 = vand.u32 4294901760, %v918_v21  ;;  %v926_v14 = vand.u32 4294901760, %v925_v34  ;;  %v3347_v11 = vand.u32 4294901760, %v2889_v59  ;;  %v2923_v34 = vld [vmem:[%s2581_s10 + $0xd8] sm:$0xff] }
  0x7c   : > { %3416 = vst [vmem:[#allocation18_spill] sm:$0xff] %v2894_v47  ;;  %v1044_v58 = vsub.f32 %v2867_v51, %v3349_v37  ;;  %v1051_v20 = vsub.f32 %v2872_v56, %v3348_v9  ;;  %v3346_v60 = vand.u32 4294901760, %v2894_v47  ;;  %v2909_v0 = vpack.c.bf16 %v776_v25, %v773_v17 }
  0x7d   : > { %v2004_v50 = vpack.c.bf16 %v926_v14, %v919_v19  ;;  %v3356_v19 = vand.u32 4294901760, %v2923_v34  ;;  %v3420_v51 = vand.u32 4294901760, %v2786_v13  ;;  %v3047_v24 = vsub.f32 %v758_v49, %v851_v41 }
  0x7e   : > { %2001 = vmatpush3.bf16.msra.mxu0 %v2000_v42  ;;  %1965 = vmatpush3.bf16.msra.mxu1 %v2828_v57  ;;  %v1045_v15 = vand.u32 4294901760, %v1044_v58  ;;  %v1052_v21 = vand.u32 4294901760, %v1051_v20  ;;  %v932_v42 = vsub.f32 %v2889_v59, %v3347_v11  ;;  %v939_v63 = vsub.f32 %v2894_v47, %v3346_v60  ;;  %v2920_v20 = vld [vmem:[%s2581_s10 + $0xd0] sm:$0xff]  ;;  %v759_v47 = vld [vmem:[%s2581_s10 + $0xf8] sm:$0xff] }
  0x7f   : > { %2003 = vmatprep.subr.bf16.mxu0 %v2002_v53  ;;  %1967 = vmatprep.subr.bf16.mxu1 %v2854_v7  ;;  %v3357_v53 = vand.u32 4294901760, %v2920_v20  ;;  %v2928_v58 = vld [vmem:[%s2581_s10 + $0x50] sm:$0xff]  ;;  %v3417_v59 = vand.u32 4294901760, %v2741_v26 }
  0x80   : > { %v2006_v1 = vpack.c.bf16 %v1052_v21, %v1045_v15  ;;  %v933_v14 = vand.u32 4294901760, %v932_v42  ;;  %v940_v17 = vand.u32 4294901760, %v939_v63  ;;  %v3355_v15 = vand.u32 4294901760, %v2928_v58 }
  0x81   : > { %v2938_v42 = vsub.f32 %v2920_v20, %v3357_v53  ;;  %v2943_v63 = vsub.f32 %v2923_v34, %v3356_v19 }
  0x82   : > { %2005 = vmatpush3.bf16.msra.mxu0 %v2004_v50  ;;  %1969 = vmatpush3.bf16.msra.mxu1 %v2909_v0  ;;  %v2008_v25 = vpack.c.bf16 %v940_v17, %v933_v14  ;;  %v2931_v50 = vld [vmem:[%s2581_s10 + $0x58] sm:$0xff]  ;;  %v2956_v17 = vld [vmem:[%s2581_s10 + $0xe0] sm:$0xff] }
  0x83   : > { %2007 = vmatprep.subr.bf16.mxu0 %v2006_v1  ;;  %v3354_v21 = vand.u32 4294901760, %v2931_v50  ;;  %v2948_v1 = vsub.f32 %v2928_v58, %v3355_v15  ;;  %v3360_v60 = vand.u32 4294901760, %v2938_v42  ;;  %v3362_v11 = vand.u32 4294901760, %v2943_v63 }
  0x84   : > { %v3363_v9 = vand.u32 4294901760, %v2956_v17  ;;  %v3377_v15 = vand.u32 4294901760, %v2969_v36 }
  0x85   : > { %v2953_v14 = vsub.f32 %v2931_v50, %v3354_v21  ;;  %v3366_v35 = vand.u32 4294901760, %v2948_v1  ;;  %v3371_v21 = vand.u32 4294901760, %v2966_v39  ;;  %v1058_v19 = vsub.f32 %v2938_v42, %v3360_v60 }
  0x86   : > { %2009 = vmatpush3.bf16.msra.mxu0 %v2008_v25  ;;  %v2959_v25 = vld [vmem:[%s2581_s10 + $0xe8] sm:$0xff]  ;;  %v1065_v53 = vsub.f32 %v2943_v63, %v3362_v11  ;;  %v2984_v5 = vsub.f32 %v2956_v17, %v3363_v9  ;;  %v3005_v9 = vsub.f32 %v2969_v36, %v3377_v15  ;;  %v3418_v15 = vand.u32 4294901760, %v2764_v44 }
  0x87   : > { %v3364_v37 = vand.u32 4294901760, %v2959_v25  ;;  %v3369_v30 = vand.u32 4294901760, %v2953_v14  ;;  %v946_v60 = vsub.f32 %v2948_v1, %v3366_v35  ;;  %v3000_v11 = vsub.f32 %v2966_v39, %v3371_v21 }
  0x88   : > { %v1066_v45 = vand.u32 4294901760, %v1065_v53  ;;  %v3383_v35 = vand.u32 4294901760, %v2984_v5  ;;  %v3017_v56 = vpack.c.bf16 %v3418_v15, %v3417_v59  ;;  %v3419_v21 = vand.u32 4294901760, %v2783_v2 }
  0x89   : > { %v2989_v62 = vsub.f32 %v2959_v25, %v3364_v37  ;;  %v953_v52 = vsub.f32 %v2953_v14, %v3369_v30  ;;  %v1059_v37 = vand.u32 4294901760, %v1058_v19  ;;  %v947_v32 = vand.u32 4294901760, %v946_v60 }
  0x8a   : > { %v1072_v53 = vsub.f32 %v2984_v5, %v3383_v35  ;;  %v3031_v26 = vpack.c.bf16 %v3420_v51, %v3419_v21  ;;  %v3421_v59 = vand.u32 4294901760, %v3000_v11  ;;  %1971 = vmatprep.subr.bf16.mxu1 %v3017_v56  ;;  %v854_v2 = vand.u32 4294901760, %v759_v47 }
  0x8b   : > { %v3382_v29 = vand.u32 4294901760, %v2989_v62  ;;  %v954_v30 = vand.u32 4294901760, %v953_v52  ;;  %v2010_v19 = vpack.c.bf16 %v1066_v45, %v1059_v37  ;;  %v742_v52 = vld [vmem:[%s2581_s10 + $0x70] sm:$0xff]  ;;  %v3422_v45 = vand.u32 4294901760, %v3005_v9  ;;  %s2305_s10 = scalar_lea.vmem %s2304_s23, 256 }
  0x8c   : > { %v960_v37 = vsub.f32 %v3000_v11, %v3421_v59  ;;  %1973 = vmatpush3.bf16.msra.mxu1 %v3031_v26  ;;  %v806_v51 = vand.u32 4294901760, %v743_v23  ;;  %v3423_v21 = vand.u32 4294901760, %v2818_v33  ;;  %v3424_v59 = vand.u32 4294901760, %v2821_v38  ;;  %p2307_p9 = scmp.lt.s32.totalorder %s2305_s10, %s2299_s22 }
  0x8d   : > { %v1079_v60 = vsub.f32 %v2989_v62, %v3382_v29  ;;  %v2012_v44 = vpack.c.bf16 %v954_v30, %v947_v32  ;;  %v967_v15 = vsub.f32 %v3005_v9, %v3422_v45  ;;  %2011 = vmatprep.subr.bf16.mxu0 %v2010_v19  ;;  %v1073_v29 = vand.u32 4294901760, %v1072_v53 }
  0x8e   : > { %v961_v13 = vand.u32 4294901760, %v960_v37  ;;  %v803_v32 = vand.u32 4294901760, %v742_v52  ;;  %v3045_v10 = vpack.c.bf16 %v3424_v59, %v3423_v21  ;;  %v3049_v19 = vsub.f32 %v759_v47, %v854_v2  ;;  %p2308_p3 = por %p2307_p9, %p2306_p0 }
  0x8f   : > { %v1080_v35 = vand.u32 4294901760, %v1079_v60  ;;  %2013 = vmatpush3.bf16.msra.mxu0 %v2012_v44  ;;  %v968_v30 = vand.u32 4294901760, %v967_v15  ;;  %v3425_v53 = vand.u32 4294901760, %v2845_v46  ;;  %v3426_v60 = vand.u32 4294901760, %v2848_v55 }
  0x90   : > { %v3057_v15 = vsub.f32 %v742_v52, %v803_v32  ;;  %v3059_v8 = vsub.f32 %v743_v23, %v806_v51  ;;  %1975 = vmatprep.subr.bf16.mxu1 %v3045_v10  ;;  %v3394_v49 = vand.u32 4294901760, %v3049_v19  ;;  %v3427_v38 = vand.u32 4294901760, %v2920_v20  ;;  %p2309_p7 = pnand %p2308_p3, %p2302_p13 }
  0x91   : > { %v2014_v45 = vpack.c.bf16 %v1080_v35, %v1073_v29  ;;  %v3055_v44 = vpack.c.bf16 %v3426_v60, %v3425_v53  ;;  %v2016_v37 = vpack.c.bf16 %v968_v30, %v961_v13  ;;  %v1085_v35 = vand.u32 4294901760, %v3047_v24 }
  0x92   : > { %v3393_v29 = vand.u32 4294901760, %v3057_v15  ;;  %v3392_v33 = vand.u32 4294901760, %v3059_v8  ;;  %v3428_v46 = vand.u32 4294901760, %v2923_v34  ;;  %v1093_v47 = vsub.f32 %v3049_v19, %v3394_v49 }
  0x93   : > { %2015 = vmatprep.subr.bf16.mxu0 %v2014_v45  ;;  %1977 = vmatpush3.bf16.msra.mxu1 %v3055_v44  ;;  %v1086_v55 = vsub.f32 %v3047_v24, %v1085_v35  ;;  %v3429_v52 = vand.u32 4294901760, %v2928_v58  ;;  %v3430_v13 = vand.u32 4294901760, %v2931_v50  ;;  %v3431_v50 = vand.u32 4294901760, %v2956_v17 }
  0x94   : > { %2017 = vmatpush3.bf16.msra.mxu0 %v2016_v37  ;;  %v3071_v23 = vpack.c.bf16 %v3428_v46, %v3427_v38  ;;  %v974_v20 = vsub.f32 %v3057_v15, %v3393_v29  ;;  %v981_v34 = vsub.f32 %v3059_v8, %v3392_v33  ;;  %v1094_v59 = vand.u32 4294901760, %v1093_v47  ;;  %v3442_v29 = vld [vmem:[#allocation18_spill] sm:$0xff] }
  0x95   : > { %v3083_v30 = vpack.c.bf16 %v3430_v13, %v3429_v52  ;;  %v1087_v21 = vand.u32 4294901760, %v1086_v55  ;;  %v3432_v60 = vand.u32 4294901760, %v2959_v25  ;;  %v3433_v46 = vand.u32 4294901760, %v2966_v39 }
  0x96   : > { %1979 = vmatprep.subr.bf16.mxu1 %v3071_v23  ;;  %v975_v45 = vand.u32 4294901760, %v974_v20  ;;  %v982_v58 = vand.u32 4294901760, %v981_v34  ;;  %v3434_v52 = vand.u32 4294901760, %v2969_v36  ;;  %v3108_v17 = vpack.c.bf16 %v854_v2, %v851_v41 }
  0x97   : > { %1981 = vmatpush3.bf16.msra.mxu1 %v3083_v30  ;;  %v2018_v53 = vpack.c.bf16 %v1094_v59, %v1087_v21  ;;  %v3097_v37 = vpack.c.bf16 %v3432_v60, %v3431_v50  ;;  %v3111_v25 = vpack.c.bf16 %v806_v51, %v803_v32  ;;  %v2022_v36 = vpack.c.bf16 %v2637_v27, %v2631_v22 }
  0x98   : > { %v2020_v38 = vpack.c.bf16 %v982_v58, %v975_v45  ;;  %v3103_v13 = vpack.c.bf16 %v3434_v52, %v3433_v46  ;;  %v2042_v39 = vpack.c.bf16 %v2943_v63, %v2938_v42  ;;  %v2044_v55 = vpack.c.bf16 %v2953_v14, %v2948_v1 }
  0x99   : > { %2019 = vmatprep.subr.bf16.mxu0 %v2018_v53  ;;  %1983 = vmatprep.subr.bf16.mxu1 %v3097_v37  ;;  %v2046_v41 = vpack.c.bf16 %v2989_v62, %v2984_v5  ;;  %v2048_v2 = vpack.c.bf16 %v3005_v9, %v3000_v11  ;;  %v2050_v32 = vpack.c.bf16 %v3049_v19, %v3047_v24 }
  0x9a   : > { %2021 = vmatpush3.bf16.msra.mxu0 %v2020_v38  ;;  %v2052_v51 = vpack.c.bf16 %v3059_v8, %v3057_v15 }
  0x9b   : > { %1985 = vmatpush3.bf16.msra.mxu1 %v3103_v13  ;;  %2055 = vmatprep.subr.bf16.mxu0 %v2719_v4 }
  0x9c   : > { %1987 = vmatprep.subr.bf16.mxu1 %v3108_v17 }
  0x9f   : > { %1989 = vmatpush3.bf16.msra.mxu1 %v3111_v25 }
  0xa0   : > { %2023 = vmatprep.subr.bf16.mxu1 %v2022_v36 }
  0xde   : > { %v257_v34 = vpop.permute.xlu0 %256 }
 0x148   : > { %v723_v47 = vpop.f32.mrb[0].mxu0 }
 0x149   : > { %v725_v20 = vpop.f32.mrb[1].mxu0 }
 0x14c   : > { %v495_v21 = vpop.f32.mrb[0].mxu1 }
 0x14d   : > { %v2150_v59 = vadd.f32 %v495_v21, %v257_v34  ;;  %v497_v45 = vpop.f32.mrb[1].mxu1 }
 0x14e   : > { %v2152_v58 = vadd.f32 %v497_v45, %v257_v34 }
 0x14f   : > { %v2151_v53 = vadd.f32 %v2150_v59, %v723_v47  ;;  %v2024_v59 = vpack.c.bf16 %v2649_v31, %v2642_v28 }
 0x150   : > { %v2153_v50 = vadd.f32 %v2152_v58, %v725_v20  ;;  %v2026_v58 = vpack.c.bf16 %v2688_v54, %v2663_v40 }
 0x151   : > { %v3128_v60 = vand.u32 4294901760, %v2151_v53 }
 0x152   : > { %v3130_v38 = vand.u32 4294901760, %v2153_v50 }
 0x153   : > { %v3133_v46 = vsub.f32 %v2151_v53, %v3128_v60  ;;  %v2028_v53 = vpack.c.bf16 %v2715_v3, %v2703_v61 }
 0x154   : > { %v857_v52 = vsub.f32 %v2153_v50, %v3130_v38  ;;  %1097 = vmatprep.mubr.f32.mxu0 %v3130_v38  ;;  %v2030_v50 = vpack.c.bf16 %v2736_v12, %v2729_v16 }
 0x155   : > { %v864_v36 = vand.u32 4294901760, %v3133_v46  ;;  %1099 = vmatmul.mubr.f32.vlgmr.msra.gmra.mrb[2].mxu0 %v3128_v60 }
 0x156   : > { %2057 = vmatpush3.bf16.msra.mxu0 %v2773_v48  ;;  %v858_v34 = vand.u32 4294901760, %v857_v52 }
 0x157   : > { %2059 = vmatprep.subr.bf16.mxu0 %v2794_v18  ;;  %v865_v47 = vsub.f32 %v3133_v46, %v864_v36 }
 0x158   : > { %1341 = vmatprep.mubr.f32.mxu0 %v858_v34  ;;  %v859_v20 = vsub.f32 %v857_v52, %v858_v34  ;;  %v2032_v34 = vpack.c.bf16 %v2761_v43, %v2756_v6 }
 0x159   : > { %v866_v45 = vand.u32 4294901760, %v865_v47  ;;  %v3435_v47 = vld [vmem:[#allocation11_spill] sm:$0xff] }
 0x15a   : > { %2061 = vmatpush3.bf16.msra.mxu0 %v2828_v57  ;;  %v860_v21 = vand.u32 4294901760, %v859_v20  ;;  %v3436_v20 = vld [vmem:[#allocation12_spill] sm:$0xff] }
 0x15b   : > { %2063 = vmatprep.subr.bf16.mxu0 %v2854_v7 }
 0x15c   : > { %861 = vmatprep.mubr.f32.mxu1 %v860_v21  ;;  %v2034_v21 = vpack.c.bf16 %v3436_v20, %v3435_v47 }
 0x15d   : > { %867 = vmatmul.mubr.f32.vlgmr.msra.gmra.mrb[2].mxu1 %v866_v45 }
 0x15e   : > { %2025 = vmatpush3.bf16.msra.mxu1 %v2024_v59  ;;  %2065 = vmatpush3.bf16.msra.mxu0 %v2909_v0  ;;  %v3438_v59 = vld [vmem:[#allocation14_spill] sm:$0xff] }
 0x15f   : > { %1234 = vmatprep.mubr.f32.mxu1 %v857_v52  ;;  %2027 = vmatprep.subr.bf16.mxu1 %v2026_v58  ;;  %v3437_v52 = vld [vmem:[#allocation13_spill] sm:$0xff]  ;;  %v3439_v58 = vld [vmem:[#allocation15_spill] sm:$0xff] }
 0x160   : > { %2067 = vmatprep.subr.bf16.mxu0 %v3017_v56  ;;  %v2036_v45 = vpack.c.bf16 %v3438_v59, %v3437_v52 }
 0x162   : > { %2029 = vmatpush3.bf16.msra.mxu1 %v2028_v53  ;;  %2069 = vmatpush3.bf16.msra.mxu0 %v3031_v26  ;;  %v3440_v53 = vld [vmem:[#allocation16_spill] sm:$0xff] }
 0x163   : > { %2031 = vmatprep.subr.bf16.mxu1 %v2030_v50  ;;  %2071 = vmatprep.subr.bf16.mxu0 %v3045_v10  ;;  %v2038_v33 = vpack.c.bf16 %v3440_v53, %v3439_v58  ;;  %v3441_v50 = vld [vmem:[#allocation17_spill] sm:$0xff] }
 0x164   : > { %v2040_v49 = vpack.c.bf16 %v3442_v29, %v3441_v50 }
 0x166   : > { %2033 = vmatpush3.bf16.msra.mxu1 %v2032_v34  ;;  %2073 = vmatpush3.bf16.msra.mxu0 %v3055_v44  ;;  %v3465_v34 = vand.u32 4294901760, %v2948_v1  ;;  %v3471_v1 = vand.u32 4294901760, %v3049_v19 }
 0x167   : > { %2035 = vmatprep.subr.bf16.mxu1 %v2034_v21  ;;  %2075 = vmatprep.subr.bf16.mxu0 %v3071_v23 }
 0x16a   : > { %2037 = vmatpush3.bf16.msra.mxu1 %v2036_v45  ;;  %2077 = vmatpush3.bf16.msra.mxu0 %v3083_v30 }
 0x16b   : > { %2039 = vmatprep.subr.bf16.mxu1 %v2038_v33  ;;  %2079 = vmatprep.subr.bf16.mxu0 %v3097_v37  ;;  %v3444_v33 = vand.u32 4294901760, %v2637_v27  ;;  %v3448_v27 = vand.u32 4294901760, %v2688_v54  ;;  %v3453_v54 = vand.u32 4294901760, %v2756_v6  ;;  %v3459_v6 = vand.u32 4294901760, %v3439_v58 }
 0x16e   : > { %2041 = vmatpush3.bf16.msra.mxu1 %v2040_v49  ;;  %2081 = vmatpush3.bf16.msra.mxu0 %v3103_v13  ;;  %v3443_v49 = vand.u32 4294901760, %v2631_v22  ;;  %v3447_v22 = vand.u32 4294901760, %v2663_v40  ;;  %v3452_v40 = vand.u32 4294901760, %v2736_v12  ;;  %v3458_v12 = vand.u32 4294901760, %v3438_v59 }
 0x16f   : > { %2043 = vmatprep.subr.bf16.mxu1 %v2042_v39  ;;  %2083 = vmatprep.subr.bf16.mxu0 %v3108_v17 }
 0x170   : > { %v2086_v39 = vpack.c.bf16 %v3444_v33, %v3443_v49 }
 0x172   : > { %2045 = vmatpush3.bf16.msra.mxu1 %v2044_v55  ;;  %2085 = vmatpush3.bf16.msra.mxu0 %v3111_v25 }
 0x173   : > { %2047 = vmatprep.subr.bf16.mxu1 %v2046_v41  ;;  %2119 = vmatprep.subr.bf16.mxu0 %v2719_v4  ;;  %v3445_v4 = vand.u32 4294901760, %v2642_v28  ;;  %v2090_v41 = vpack.c.bf16 %v3448_v27, %v3447_v22  ;;  %v3450_v28 = vand.u32 4294901760, %v2715_v3  ;;  %v3456_v3 = vand.u32 4294901760, %v3436_v20 }
 0x175   : > { %1345 = vmatmul.mubr.f32.vlgmr.msra.gmra.mrb[4].mxu0 %v864_v36 }
 0x176   : > { %2049 = vmatpush3.bf16.msra.mxu1 %v2048_v2  ;;  %2121 = vmatpush3.bf16.msra.mxu0 %v2773_v48  ;;  %v3446_v48 = vand.u32 4294901760, %v2649_v31  ;;  %v3451_v31 = vand.u32 4294901760, %v2729_v16  ;;  %v3454_v2 = vand.u32 4294901760, %v2761_v43  ;;  %v3457_v16 = vand.u32 4294901760, %v3437_v52 }
 0x177   : > { %1615 = vmatprep.mubr.f32.mxu0 %v3130_v38  ;;  %2051 = vmatprep.subr.bf16.mxu1 %v2050_v32  ;;  %v3460_v43 = vand.u32 4294901760, %v3440_v53 }
 0x178   : > { %2123 = vmatprep.subr.bf16.mxu0 %v2794_v18  ;;  %v2088_v55 = vpack.c.bf16 %v3446_v48, %v3445_v4  ;;  %v2096_v32 = vpack.c.bf16 %v3454_v2, %v3453_v54 }
 0x17a   : > { %2053 = vmatpush3.bf16.msra.mxu1 %v2052_v51  ;;  %2125 = vmatpush3.bf16.msra.mxu0 %v2828_v57  ;;  %v3449_v57 = vand.u32 4294901760, %v2703_v61  ;;  %v3455_v61 = vand.u32 4294901760, %v3435_v47  ;;  %v3461_v51 = vand.u32 4294901760, %v3441_v50 }
 0x17b   : > { %2087 = vmatprep.subr.bf16.mxu1 %v2086_v39  ;;  %2127 = vmatprep.subr.bf16.mxu0 %v2854_v7  ;;  %v2094_v7 = vpack.c.bf16 %v3452_v40, %v3451_v31 }
 0x17c   : > { %v2092_v18 = vpack.c.bf16 %v3450_v28, %v3449_v57 }
 0x17d   : > { %1237 = vmatmul.mubr.f32.vlgmr.msra.gmra.mrb[4].mxu1 %v3133_v46  ;;  %v3463_v46 = vand.u32 4294901760, %v2938_v42  ;;  %v3469_v42 = vand.u32 4294901760, %v3000_v11 }
 0x17e   : > { %2089 = vmatpush3.bf16.msra.mxu1 %v2088_v55  ;;  %1511 = vmatprep.mubr.f32.mxu1 %v3130_v38 }
 0x17f   : > { %2129 = vmatpush3.bf16.msra.mxu0 %v2909_v0  ;;  %2091 = vmatprep.subr.bf16.mxu1 %v2090_v41  ;;  %v2098_v0 = vpack.c.bf16 %v3456_v3, %v3455_v61 }
 0x180   : > { %2131 = vmatprep.subr.bf16.mxu0 %v3017_v56  ;;  %v2100_v56 = vpack.c.bf16 %v3458_v12, %v3457_v16 }
 0x182   : > { %2093 = vmatpush3.bf16.msra.mxu1 %v2092_v18 }
 0x183   : > { %2133 = vmatpush3.bf16.msra.mxu0 %v3031_v26  ;;  %2095 = vmatprep.subr.bf16.mxu1 %v2094_v7  ;;  %v2102_v26 = vpack.c.bf16 %v3460_v43, %v3459_v6 }
 0x184   : > { %2135 = vmatprep.subr.bf16.mxu0 %v3045_v10  ;;  %v3462_v10 = vand.u32 4294901760, %v3442_v29  ;;  %v3467_v29 = vand.u32 4294901760, %v2984_v5  ;;  %v3473_v5 = vand.u32 4294901760, %v3059_v8 }
 0x186   : > { %2097 = vmatpush3.bf16.msra.mxu1 %v2096_v32  ;;  %v2104_v38 = vpack.c.bf16 %v3462_v10, %v3461_v51 }
 0x187   : > { %2137 = vmatpush3.bf16.msra.mxu0 %v3055_v44  ;;  %2099 = vmatprep.subr.bf16.mxu1 %v2098_v0  ;;  %v3464_v44 = vand.u32 4294901760, %v2943_v63  ;;  %v3470_v63 = vand.u32 4294901760, %v3005_v9 }
 0x188   : > { %2139 = vmatprep.subr.bf16.mxu0 %v3071_v23  ;;  %v3466_v23 = vand.u32 4294901760, %v2953_v14  ;;  %v2114_v14 = vpack.c.bf16 %v3471_v1, %v1085_v35 }
 0x189   : > { %v2106_v36 = vpack.c.bf16 %v3464_v44, %v3463_v46 }
 0x18a   : > { %2101 = vmatpush3.bf16.msra.mxu1 %v2100_v56  ;;  %v2108_v47 = vpack.c.bf16 %v3466_v23, %v3465_v34 }
 0x18b   : > { %2141 = vmatpush3.bf16.msra.mxu0 %v3083_v30  ;;  %2103 = vmatprep.subr.bf16.mxu1 %v2102_v26  ;;  %v3468_v30 = vand.u32 4294901760, %v2989_v62  ;;  %v3472_v62 = vand.u32 4294901760, %v3057_v15 }
 0x18c   : > { %2143 = vmatprep.subr.bf16.mxu0 %v3097_v37  ;;  %v2112_v37 = vpack.c.bf16 %v3470_v63, %v3469_v42 }
 0x18d   : > { %v2110_v20 = vpack.c.bf16 %v3468_v30, %v3467_v29 }
 0x18e   : > { %2105 = vmatpush3.bf16.msra.mxu1 %v2104_v38 }
 0x18f   : > { %2145 = vmatpush3.bf16.msra.mxu0 %v3103_v13  ;;  %2107 = vmatprep.subr.bf16.mxu1 %v2106_v36  ;;  %v2116_v13 = vpack.c.bf16 %v3473_v5, %v3472_v62 }
 0x190   : > { %2147 = vmatprep.subr.bf16.mxu0 %v3108_v17 }
 0x192   : > { %2109 = vmatpush3.bf16.msra.mxu1 %v2108_v47 }
 0x193   : > { %2149 = vmatpush3.bf16.msra.mxu0 %v3111_v25  ;;  %2111 = vmatprep.subr.bf16.mxu1 %v2110_v20 }
 0x196   : > { %1617 = vmatmul.mubr.f32.vlgmr.msra.gmra.mrb[6].mxu0 %v3128_v60  ;;  %2113 = vmatpush3.bf16.msra.mxu1 %v2112_v37 }
 0x197   : > { %2115 = vmatprep.subr.bf16.mxu1 %v2114_v14 }
 0x19a   : > { %2117 = vmatpush3.bf16.msra.mxu1 %v2116_v13 }
 0x19d   : > { %1513 = vmatmul.mubr.f32.vlgmr.msra.gmra.mrb[6].mxu1 %v3128_v60 }
 0x228   : > { %v1815_v11 = vpop.f32.mrb[2].mxu0 }
 0x229   : > { %v1816_v9 = vpop.f32.mrb[3].mxu0 }
 0x22a   : > { %v1817_v17 = vadd.f32 %v1816_v9, %v1815_v11 }
 0x230   : > { %v1780_v24 = vpop.f32.mrb[2].mxu1 }
 0x231   : > { %v1781_v25 = vpop.f32.mrb[3].mxu1 }
 0x232   : > { %v1782_v19 = vadd.f32 %v1781_v25, %v1780_v24 }
 0x234   : > { %v1101_v35 = vadd.f32 %v1817_v17, %v1782_v19 }
 0x248   : > { %v1885_v21 = vpop.f32.mrb[4].mxu0 }
 0x249   : > { %v1886_v52 = vpop.f32.mrb[5].mxu0 }
 0x24a   : > { %v1887_v59 = vadd.f32 %v1886_v52, %v1885_v21 }
 0x250   : > { %v1850_v15 = vpop.f32.mrb[4].mxu1 }
 0x251   : > { %v1851_v45 = vpop.f32.mrb[5].mxu1 }
 0x252   : > { %v1852_v8 = vadd.f32 %v1851_v45, %v1850_v15 }
 0x254   : > { %v1239_v58 = vadd.f32 %v1852_v8, %v1101_v35 }
 0x256   : > { %v1347_v53 = vadd.f32 %v1887_v59, %v1239_v58 }
 0x269   : > { %v1955_v50 = vpop.f32.mrb[6].mxu0 }
 0x26a   : > { %v1956_v60 = vpop.f32.mrb[7].mxu0 }
 0x26b   : > { %v1957_v49 = vadd.f32 %v1956_v60, %v1955_v50 }
 0x270   : > { %v1920_v33 = vpop.f32.mrb[6].mxu1 }
 0x271   : > { %v1921_v39 = vpop.f32.mrb[7].mxu1 }
 0x272   : > { %v1922_v4 = vadd.f32 %v1921_v39, %v1920_v33 }
 0x274   : > { %v1515_v48 = vadd.f32 %v1922_v4, %v1347_v53 }
 0x276   : > { %v1619_v55 = vadd.f32 %v1957_v49, %v1515_v48 }
 0x278   : > { %1622 = vst [vmem:[%s249_s9] sm:$0x3f] %v1619_v55 }
 0x279   : > { %2312 = shalt.err (!%p2309_p7)
}
 0x27a   : > { %s2313_s7 = scalar_lea.hbm %s3275_s21, 128  ;;  %s2317_s26 = scalar_lea.hbm %s3327_s4, 1024 }
 0x27b   : > { %p2314_p1 = scmp.ne.s32.totalorder %s3275_s21, %s2313_s7  ;;  %p2318_p12 = scmp.lt.u32.totalorder %s3275_s21, %s3327_s4 }
 0x27c   : > { %p2319_p2 = scmp.lt.u32.totalorder %s2317_s26, %s2313_s7  ;;  %p2321_p6 = scmp.lt.u32.totalorder %s2313_s7, %s3275_s21 }
 0x27d   : > { %p2315_p4 = pnand %p2314_p1, %p3474_p10 }
 0x27e   : > { %p2320_p8 = por %p2319_p2, %p2318_p12 }
 0x27f   : > { %p2316_p5 = pneg %p2315_p4 }
 0x280   : > { %p2322_p11 = por %p2321_p6, %p2320_p8 }
 0x282   : > { %p2323_p13 = pnand %p2322_p11, %p2316_p5 }
 0x284   : > { %2326 = shalt.err (!%p2323_p13)
}
 0x285   : > { %2168 = dma.vmem_to_hbm [thread:$0]  (%p3474_p10), %s3277_s30, 128, %s3275_s21, %s1624_s13  }
 0x286 PF: > { %p2185_p0 = scmp.ge.s32.totalorder %s2385_s20, 2  ;;  %s1651_s11 = sand.u32 1, %s2365_s15  }
 0x287   : > { %p3475_p9 = scmp.ne.s32.totalorder %s3399_s28, 0  ;;  %s1652_s9 = scalar_lea.sflag [#allocation4], %s1651_s11 }
 0x289   : > { %p2179_p3 = pnand %p2185_p0, %p3475_p9 }
 0x28b   : > { %2360 = dma.done.wait (!%p2179_p3), %s1652_s9, 128  }
 0x28c   : > { %2362 = vsyncadd (!%p2179_p3), %s1652_s9, 4294967168  ;;  %s21_s20 = sadd.s32 1, %s2385_s20   ;;  %s3476_s15 = smov %s2369_s16 }
 0x28d   : > { %p18_p7 = scmp.ge.s32.totalorder %s21_s20, 10   ;;  %s3477_s16 = smov %s2373_s17 }
 0x28e   : > { %s3478_s17 = smov %s2538_s5  ;;  %s3479_s18 = smov %s2381_s19 }
 0x28f   : > { %s3480_s19 = smov %s3482_s8  ;;  %20 = sbr.rel (!%p18_p7) target bundleno = 7 (0x7), region = 87 }
 0x296   :  { %1657 = vsyncpa [#allocation3], 1 }
 0x297   :  { %1659 = vsyncpa [#allocation3 + $0x1], 1 }
 0x298   :  { %1660 = vsyncpa [#allocation6], 1 }
 0x299   :  { %1662 = vsyncpa [#allocation6 + $0x1], 1 }
 0x29a   :  { %1663 = vsyncpa [#allocation4], 1 }
 0x29b   :  { %1665 = vsyncpa [#allocation4 + $0x1], 1 }

</bundles_post_ra>
